<compile_context>
chip_gen: v7x
topology: tpu7x:2x2x1
jax: 0.10.0
libtpu: 0.0.40
codegen_flags: <defaults>
</compile_context>

<pallas_src>
import jax
import jax.numpy as jnp
from jax import lax
from jax.experimental import pallas as pl
from jax.experimental.pallas import tpu as pltpu

_LANE = 128
_SUBLANE = 8
_MAX_SX_TILE = 256  # rows of x processed per grid step (VMEM-friendly at prod sizes)


def _round_up(n, m):
    return ((n + m - 1) // m) * m


def _pad_features(t, f_pad, add_bias):
    """Pad feature (last) dim to f_pad lanes; bias lane = 1, remaining lanes = 0."""
    b, s, n = t.shape
    pieces = [t]
    if add_bias:
        pieces.append(jnp.ones((b, s, 1), dtype=t.dtype))
    used = n + int(add_bias)
    if f_pad > used:
        pieces.append(jnp.zeros((b, s, f_pad - used), dtype=t.dtype))
    return jnp.concatenate(pieces, axis=-1)


def _biaffine_kernel(x_ref, y_ref, w_ref, o_ref):
    # x_ref: (1, tsx, Fp)    y_ref: (1, Syp, Fp)
    # w_ref: (Fp, n_out*Fp)  o_ref: (1, n_out, tsx, Syp)
    x = x_ref[0]                       # (tsx, Fp)
    y = y_ref[0]                       # (Syp, Fp)
    w = w_ref[...]                     # (Fp, n_out*Fp)
    n_out = o_ref.shape[1]
    f_pad = y.shape[1]

    # One wide MXU pass covering all n_out heads: (tsx, Fp) @ (Fp, n_out*Fp).
    tmp = jnp.dot(x, w, preferred_element_type=jnp.float32)   # (tsx, n_out*Fp)

    # Static unroll over the (tiny) n_out heads; slice starts are 128-lane
    # aligned (f_pad is a 128 multiple), so no relayout.  Contract directly
    # against y's last dim (no y.T).
    for o in range(n_out):
        t_o = tmp[:, o * f_pad:(o + 1) * f_pad]                # (tsx, Fp)
        s = lax.dot_general(
            t_o, y,
            dimension_numbers=(((1,), (1,)), ((), ())),
            preferred_element_type=jnp.float32,
        )                                                      # (tsx, Syp)
        o_ref[0, o] = s.astype(o_ref.dtype)


def biaffine_forward(x, y, weight, bias_x=True, bias_y=True):
    """Pallas Biaffine forward.

    x: (B, Sx, n_in), y: (B, Sy, n_in),
    weight: (n_out, n_in + bias_x, n_in + bias_y)
    returns: (B, n_out, Sx, Sy) float32
    """
    B, Sx, n_in_x = x.shape
    By, Sy, n_in_y = y.shape
    assert B == By
    n_out = weight.shape[0]
    Fx = n_in_x + int(bias_x)
    Fy = n_in_y + int(bias_y)
    assert weight.shape == (n_out, Fx, Fy)

    # Padded sizes: feature dim -> shared 128-lane multiple (K tile),
    # Sx -> tile multiple (tile itself a sublane multiple),
    # Sy -> 128 multiple for lane-dense (unmasked) output stores.
    Fp = _round_up(max(Fx, Fy), _LANE)
    tsx = min(_MAX_SX_TILE, _round_up(Sx, _SUBLANE))
    Sxp = _round_up(Sx, tsx)
    Syp = _round_up(Sy, _LANE)
    n_sx_tiles = Sxp // tsx

    # Feature padding with the bias lane (replaces concat-with-ones), then
    # zero-pad the sequence dim (padded rows/cols are sliced off below).
    x_p = _pad_features(x, Fp, bias_x)                      # (B, Sx, Fp)
    y_p = _pad_features(y, Fp, bias_y)                      # (B, Sy, Fp)
    x_p = jnp.pad(x_p, ((0, 0), (0, Sxp - Sx), (0, 0)))     # (B, Sxp, Fp)
    y_p = jnp.pad(y_p, ((0, 0), (0, Syp - Sy), (0, 0)))     # (B, Syp, Fp)

    # Fuse n_out into one (Fp, n_out*Fp) operand:
    #   w_flat[i, o*Fp + j] = weight[o, i, j]   (zero in padded lanes).
    w_pad = jnp.pad(weight, ((0, 0), (0, Fp - Fx), (0, Fp - Fy)))
    w_flat = jnp.transpose(w_pad, (1, 0, 2)).reshape(Fp, n_out * Fp)

    out = pl.pallas_call(
        _biaffine_kernel,
        out_shape=jax.ShapeDtypeStruct((B, n_out, Sxp, Syp), jnp.float32),
        grid_spec=pltpu.PrefetchScalarGridSpec(
            num_scalar_prefetch=0,
            grid=(B, n_sx_tiles),
            in_specs=[
                pl.BlockSpec((1, tsx, Fp), lambda b, i: (b, i, 0)),
                # y and weight: constant along the Sx axis -> fetched once per
                # batch (weight once total), resident across Sx tiles.
                pl.BlockSpec((1, Syp, Fp), lambda b, i: (b, 0, 0)),
                pl.BlockSpec((Fp, n_out * Fp), lambda b, i: (0, 0)),
            ],
            out_specs=pl.BlockSpec(
                (1, n_out, tsx, Syp), lambda b, i: (b, 0, i, 0)
            ),
        ),
        compiler_params=pltpu.CompilerParams(
            dimension_semantics=("parallel", "parallel"),
        ),
    )(x_p, y_p, w_flat)

    # Slice padded sequence dims back to the module's output shape.
    return out[:, :, :Sx, :Sy]


if __name__ == "__main__":
    # Module config consistent with the PyTorch forward:
    #   n_in=32, n_out=2, bias_x=True, bias_y=True
    #   x: (batch=2, seq=8, n_in=32), y: (batch=2, seq=8, n_in=32)
    n_in, n_out = 32, 2
    bias_x, bias_y = True, True
    B, S = 2, 8

    key = jax.random.PRNGKey(0)
    kx, ky, kw = jax.random.split(key, 3)
    x = jax.random.normal(kx, (B, S, n_in), dtype=jnp.float32)
    y = jax.random.normal(ky, (B, S, n_in), dtype=jnp.float32)

    # The PyTorch module's init_weights() zeros the weight; a zero weight makes
    # the correctness check trivial, so use a deterministic small random init
    # with the identical shape nn.Parameter(n_out, n_in+bias_x, n_in+bias_y).
    weight = 0.02 * jax.random.normal(
        kw, (n_out, n_in + int(bias_x), n_in + int(bias_y)), dtype=jnp.float32
    )

    s = biaffine_forward(x, y, weight, bias_x=bias_x, bias_y=bias_y)
    s = jax.block_until_ready(s)

    # Reference: exactly the module's einsum semantics.
    x_b = jnp.concatenate([x, jnp.ones_like(x[..., :1])], axis=-1)
    y_b = jnp.concatenate([y, jnp.ones_like(y[..., :1])], axis=-1)
    s_ref = jnp.einsum("bxi,oij,byj->boxy", x_b, weight, y_b)

    assert s.shape == (B, n_out, S, S)
    assert jnp.allclose(s, s_ref, atol=1e-4, rtol=1e-4)
    print("KERNEL_OK")
</pallas_src>

<mosaic_0001>
module attributes {stable_mosaic.version = 11 : i64} {
  func.func @_biaffine_kernel(%arg0: i32, %arg1: i32, %arg2: memref<1x8x128xf32, #tpu.memory_space<vmem>>, %arg3: memref<1x128x128xf32, #tpu.memory_space<vmem>>, %arg4: memref<128x256xf32, #tpu.memory_space<vmem>>, %arg5: memref<1x2x8x128xf32, #tpu.memory_space<vmem>>) attributes {dimension_semantics = [#tpu.dimension_semantics<parallel>, #tpu.dimension_semantics<parallel>], iteration_bounds = array<i64: 2, 1>, scalar_prefetch = 0 : i64, scratch_operands = 0 : i64, tpu.core_type = #tpu.core_type<tc>, window_params = [{transform_indices = @transform_0, window_bounds = array<i64: 1, 8, 128>}, {transform_indices = @transform_1, window_bounds = array<i64: 1, 128, 128>}, {pipeline_mode = #tpu.pipeline_mode<synchronous>, transform_indices = @transform_2, window_bounds = array<i64: 128, 256>}, {transform_indices = @transform_3, window_bounds = array<i64: 1, 2, 8, 128>}]} {
    %c0 = arith.constant 0 : index
    %c0_0 = arith.constant 0 : index
    %c0_1 = arith.constant 0 : index
    %0 = vector.load %arg2[%c0, %c0_0, %c0_1] : memref<1x8x128xf32, #tpu.memory_space<vmem>>, vector<1x8x128xf32>
    %1 = vector.shape_cast %0 : vector<1x8x128xf32> to vector<8x128xf32>
    %c0_2 = arith.constant 0 : index
    %c0_3 = arith.constant 0 : index
    %c0_4 = arith.constant 0 : index
    %2 = vector.load %arg3[%c0_2, %c0_3, %c0_4] : memref<1x128x128xf32, #tpu.memory_space<vmem>>, vector<1x128x128xf32>
    %3 = vector.shape_cast %2 : vector<1x128x128xf32> to vector<128x128xf32>
    %c0_5 = arith.constant 0 : index
    %c0_6 = arith.constant 0 : index
    %4 = vector.load %arg4[%c0_5, %c0_6] : memref<128x256xf32, #tpu.memory_space<vmem>>, vector<128x256xf32>
    %cst = arith.constant dense<0.000000e+00> : vector<8x256xf32>
    %5 = tpu.matmul %1, %4, %cst {dimension_numbers = #tpu.dot_dimension_numbers<[1], [0], [0], [1], [0, 0, 1, 1], [], []>} : vector<8x128xf32>, vector<128x256xf32>, vector<8x256xf32> -> vector<8x256xf32>
    %6 = vector.extract_strided_slice %5 {offsets = [0, 0], sizes = [8, 128], strides = [1, 1]} : vector<8x256xf32> to vector<8x128xf32>
    %cst_7 = arith.constant dense<0.000000e+00> : vector<8x128xf32>
    %7 = tpu.matmul %6, %3, %cst_7 {dimension_numbers = #tpu.dot_dimension_numbers<[1], [1], [0], [0], [0, 0, 1, 0], [], []>} : vector<8x128xf32>, vector<128x128xf32>, vector<8x128xf32> -> vector<8x128xf32>
    %c0_8 = arith.constant 0 : index
    %c0_9 = arith.constant 0 : index
    %c0_10 = arith.constant 0 : index
    %c0_11 = arith.constant 0 : index
    %8 = vector.load %arg5[%c0_8, %c0_9, %c0_10, %c0_11] : memref<1x2x8x128xf32, #tpu.memory_space<vmem>>, vector<1x1x8x128xf32>
    %9 = vector.shape_cast %8 : vector<1x1x8x128xf32> to vector<8x128xf32>
    %10 = vector.shape_cast %7 : vector<8x128xf32> to vector<1x1x8x128xf32>
    tpu.vector_store %arg5[%c0_8, %c0_9, %c0_10, %c0_11], %10 {strides = array<i32>} : memref<1x2x8x128xf32, #tpu.memory_space<vmem>>, vector<1x1x8x128xf32>,
    %11 = vector.extract_strided_slice %5 {offsets = [0, 128], sizes = [8, 128], strides = [1, 1]} : vector<8x256xf32> to vector<8x128xf32>
    %cst_12 = arith.constant dense<0.000000e+00> : vector<8x128xf32>
    %12 = tpu.matmul %11, %3, %cst_12 {dimension_numbers = #tpu.dot_dimension_numbers<[1], [1], [0], [0], [0, 0, 1, 0], [], []>} : vector<8x128xf32>, vector<128x128xf32>, vector<8x128xf32> -> vector<8x128xf32>
    %c0_13 = arith.constant 0 : index
    %c1 = arith.constant 1 : index
    %c0_14 = arith.constant 0 : index
    %c0_15 = arith.constant 0 : index
    %13 = vector.load %arg5[%c0_13, %c1, %c0_14, %c0_15] : memref<1x2x8x128xf32, #tpu.memory_space<vmem>>, vector<1x1x8x128xf32>
    %14 = vector.shape_cast %13 : vector<1x1x8x128xf32> to vector<8x128xf32>
    %15 = vector.shape_cast %12 : vector<8x128xf32> to vector<1x1x8x128xf32>
    tpu.vector_store %arg5[%c0_13, %c1, %c0_14, %c0_15], %15 {strides = array<i32>} : memref<1x2x8x128xf32, #tpu.memory_space<vmem>>, vector<1x1x8x128xf32>,
    return
  }
  func.func @transform_0(%arg0: i32, %arg1: i32) -> (i32, i32, i32) {
    %c0_i32 = arith.constant 0 : i32
    %c0_i32_0 = arith.constant 0 : i32
    return %arg0, %arg1, %c0_i32 : i32, i32, i32
  }
  func.func @transform_1(%arg0: i32, %arg1: i32) -> (i32, i32, i32) {
    %c0_i32 = arith.constant 0 : i32
    %c0_i32_0 = arith.constant 0 : i32
    %c0_i32_1 = arith.constant 0 : i32
    return %arg0, %c0_i32, %c0_i32_0 : i32, i32, i32
  }
  func.func @transform_2(%arg0: i32, %arg1: i32) -> (i32, i32) {
    %c0_i32 = arith.constant 0 : i32
    %c0_i32_0 = arith.constant 0 : i32
    %c0_i32_1 = arith.constant 0 : i32
    return %c0_i32, %c0_i32_0 : i32, i32
  }
  func.func @transform_3(%arg0: i32, %arg1: i32) -> (i32, i32, i32, i32) {
    %c0_i32 = arith.constant 0 : i32
    %c0_i32_0 = arith.constant 0 : i32
    %c0_i32_1 = arith.constant 0 : i32
    return %arg0, %c0_i32, %arg1, %c0_i32_0 : i32, i32, i32, i32
  }
}

</mosaic_0001>

<bundles_post_ra>
// kernel: tpu_custom_call.1
= control target key start
LH: loop header
LB: loop body
LE: loop exit
PB: predicated region body
PF: predicated region fallthrough
CT: control target
= control target key end

     0   :  { %s1461_s0 = inlined_call_operand.hbm [shape: f32[2,8,128], index: 0, kind: input, shape index: {}]   ;;  %s1462_s1 = inlined_call_operand.hbm [shape: f32[2,128,128], index: 1, kind: input, shape index: {}]   ;;  %s1463_s2 = inlined_call_operand.hbm [shape: f32[128,256], index: 2, kind: input, shape index: {}]   ;;  %s1464_s3 = inlined_call_operand.hbm [shape: f32[2,2,8,128], index: 3, kind: output, shape index: {}]  }
   0x1   :  { %1468 = sst [smem:[#allocation13_spill]] %s1461_s0 }
   0x2   :  { %8 = vsyncpa [#allocation3], 0 }
   0x3   :  { %10 = vsyncpa [#allocation3 + $0x1], 0 }
   0x4   :  { %11 = vsyncpa [#allocation6], 0 }
   0x5   :  { %13 = vsyncpa [#allocation6 + $0x1], 0 }
   0x6   :  { %14 = vsyncpa [#allocation4], 0 }
   0x7   :  { %16 = vsyncpa [#allocation4 + $0x1], 0  ;;  %s1158_s12 = smov 0   ;;  %s1160_s13 = smov 0  }
   0x8   :  { %s1162_s14 = smov 0   ;;  %s1164_s15 = smov 0  }
   0x9   :  { %s1166_s16 = smov 0   ;;  %s1168_s17 = smov 0  }
   0xa LB: > { %s1189_s18 = sadd.s32 4294967295, %s1123_s17   ;;  %s652_s19 = sadd.s32 4294967294, %s1123_s17   ;;  %s1123_s17 = sphi %s1168_s17, %s22_s17   ;;  %s1119_s16 = sphi %s1166_s16, %s1488_s16   ;;  %s1115_s15 = sphi %s1164_s15, %s1487_s15   ;;  %s1111_s14 = sphi %s1162_s14, %s1486_s14   ;;  %s1107_s13 = sphi %s1160_s13, %s1485_s13   ;;  %s1103_s12 = sphi %s1158_s12, %s1484_s12  }
   0xb   : > { %p56_p0 = scmp.ne.s32.totalorder %s1107_s13, %s1103_s12  ;;  %p1465_p1 = scmp.eq.s32.totalorder %s1189_s18, 0 }
   0xc   : > { %p135_p3 = scmp.eq.s32.totalorder %s652_s19, 1  ;;  %p653_p5 = scmp.ge.s32.totalorder %s1123_s17, 1 }
   0xd   : > { %p1198_p4 = por %p1465_p1, %p56_p0  ;;  %p142_p7 = scmp.lt.s32.totalorder %s1123_s17, 3 }
   0xe   : > { %p1203_p6 = por %p135_p3, %p56_p0  ;;  %s1125_s23 = smov [#allocation7]  }
   0xf   : > { %s1469_s20 = scalar_select %p1198_p4, 1, 0 }
  0x10   : > { %s1470_s21 = scalar_select %p1203_p6, 1, 0 }
  0x11   : > { %p1208_p8 = pnand %p653_p5, %p142_p7  ;;  %s154_s24 = sshll.u32 %s1125_s23, 4  ;;  %s155_s24 = int_to_ptr.vmem [resolvable:$true] %s154_s24 }
  0x12   : > { %s34_s26 = sadd.s32 1, %s1119_s16  ;;  %s945_s29 = scalar_lea.hbm %s1463_s2, 4096 }
  0x13   : > { %s1471_s22 = scalar_select %p1208_p8, 1, 0 }
  0x14   : > { %p868_p9 = pneg %p1208_p8  ;;  %p946_p12 = scmp.ne.s32.totalorder %s1463_s2, %s945_s29 }
  0x15   : > { %p952_p5 = scmp.lt.u32.totalorder %s945_s29, %s1463_s2 }
  0x16   : > { %p1217_p11 = pnand %p868_p9, %p1465_p1 }
  0x18   : > { %p947_p13 = pneg %p1217_p11 }
  0x1a   : > { %p948_p0 = pnand %p947_p13, %p946_p12 }
  0x1c   : > { %p949_p3 = pneg %p948_p0 }
  0x1e   : > { %p954_p7 = pnand %p952_p5, %p949_p3 }
  0x20   : > { %957 = shalt.err (!%p954_p7)
}
  0x21   : > { %s958_s7 = scalar_lea.vmem %s155_s24, 4096  ;;  %p966_p2 = scmp.lt.s32.totalorder %s155_s24, %s155_s24 }
  0x22   : > { %p959_p9 = scmp.ne.s32.totalorder %s155_s24, %s958_s7  ;;  %p967_p6 = scmp.lt.s32.totalorder %s958_s7, %s958_s7 }
  0x24   : > { %p961_p10 = pnand %p959_p9, %p947_p13  ;;  %p968_p4 = por %p967_p6, %p966_p2 }
  0x26   : > { %p962_p1 = pneg %p961_p10 }
  0x28   : > { %p969_p8 = pnand %p968_p4, %p962_p1 }
  0x2a   : > { %972 = shalt.err (!%p969_p8)
}
  0x2b   : > { %s1126_s8 = smov 256   ;;  %s1127_s9 = smov 16  }
  0x2c   : > { %871 = dma.hbm_to_vmem [thread:$0]  (!%p1217_p11), %s1463_s2, 4096, %s155_s24, [#allocation6], %s1126_s8, %s1126_s8, %s1127_s9  }
  0x2d   : > { %p36_p1 = scmp.ge.s32.totalorder %s34_s26, 2  ;;  %s43_s19 = sadd.s32 1, %s1111_s14 }
  0x2e   : > { %p50_p2 = scmp.ne.s32.totalorder %s1111_s14, %s1107_s13  ;;  %p51_p4 = scmp.eq.s32.totalorder %s1123_s17, 0 }
  0x2f   : > { %s1490_s26 = smov (%p36_p1, %s34_s26), 0  ;;  %p1474_p8 = scmp.eq.s32.totalorder %s1189_s18, 1 }
  0x30   : > { %p1244_p6 = por %p51_p4, %p50_p2  ;;  %s38_s27 = ssub.s32 %s1119_s16, %s1490_s26 }
  0x31   : > { %p1250_p10 = por %p1474_p8, %p50_p2  ;;  %p884_p11 = scmp.lt.s32.totalorder %s1123_s17, 2 }
  0x32   : > { %p41_p12 = scmp.eq.s32.totalorder %s38_s27, 0  ;;  %s1258_s24 = sand.u32 1, %s1111_s14  }
  0x33   : > { %s656_s28 = sshll.u32 %s1258_s24, 3  ;;  %s657_s30 = sshll.u32 %s1119_s16, 7 }
  0x34   : > { %s1262_s29 = scalar_select %p41_p12, %s1111_s14, %s43_s19  }
  0x35   : > { %s1476_s0 = sld [smem:[#allocation13_spill]]  ;;  %s172_s7 = scalar_lea.vmem [#allocation2], %s656_s28 }
  0x36   : > { %s180_s8 = sshll.u32 %s172_s7, 4  ;;  %p1274_p13 = pnand %p884_p11, %p1244_p6  ;;  %s1270_s8 = int_to_ptr.vmem [resolvable:$true] %s180_s8 }
  0x37   : > { %s658_s10 = sshll.u32 %s1258_s24, 7  ;;  %s672_s11 = sshll.u32 %s1119_s16, 11 }
  0x38   : > { %s169_s19 = scalar_lea.sflag [#allocation3], %s1258_s24  ;;  %p975_p3 = pneg %p1274_p13 }
  0x3b   : > { %s1268_s6 = scalar_lea.hbm %s1476_s0, %s657_s30  ;;  %s978_s23 = scalar_lea.hbm %s1476_s0, 256 }
  0x3c   : > { %s973_s27 = scalar_lea.hbm %s1268_s6, 128  ;;  %p979_p9 = scmp.lt.u32.totalorder %s1268_s6, %s1476_s0 }
  0x3d   : > { %p974_p0 = scmp.ne.s32.totalorder %s1268_s6, %s973_s27  ;;  %p980_p1 = scmp.lt.u32.totalorder %s978_s23, %s973_s27 }
  0x3e   : > { %p982_p4 = scmp.lt.u32.totalorder %s973_s27, %s1268_s6 }
  0x3f   : > { %p976_p5 = pnand %p975_p3, %p974_p0  ;;  %p981_p2 = por %p980_p1, %p979_p9 }
  0x41   : > { %p977_p7 = pneg %p976_p5  ;;  %p983_p6 = por %p982_p4, %p981_p2 }
  0x43   : > { %p984_p8 = pnand %p983_p6, %p977_p7 }
  0x45   : > { %987 = shalt.err (!%p984_p8)
}
  0x46   : > { %s988_s7 = scalar_lea.vmem %s1270_s8, 128  ;;  %s1128_s28 = smov [#allocation2]  }
  0x47   : > { %p989_p11 = scmp.ne.s32.totalorder %s1270_s8, %s988_s7  ;;  %s993_s30 = sshll.u32 %s1128_s28, 4  ;;  %s994_s30 = int_to_ptr.vmem [resolvable:$false] %s993_s30 }
  0x48   : > { %s995_s4 = scalar_lea.vmem %s994_s30, 256  ;;  %p996_p5 = scmp.lt.s32.totalorder %s1270_s8, %s994_s30 }
  0x49   : > { %p991_p12 = pnand %p989_p11, %p975_p3  ;;  %p997_p9 = scmp.lt.s32.totalorder %s995_s4, %s988_s7 }
  0x4b   : > { %p992_p0 = pneg %p991_p12  ;;  %p998_p1 = por %p997_p9, %p996_p5 }
  0x4d   : > { %p999_p2 = pnand %p998_p1, %p992_p0 }
  0x4f   : > { %1002 = shalt.err (!%p999_p2)
}
  0x50   : > { %875 = dma.hbm_to_vmem [thread:$0]  (!%p1274_p13), %s1268_s6, 128, %s1270_s8, %s169_s19  }
  0x51   : > { %s191_s27 = scalar_lea.vmem [#allocation5], %s658_s10  ;;  %s187_s5 = sand.u32 1, %s1123_s17  }
  0x52   : > { %s198_s23 = sshll.u32 %s191_s27, 4  ;;  %s1316_s30 = scalar_lea.hbm %s1462_s1, %s672_s11  ;;  %s1309_s23 = int_to_ptr.vmem [resolvable:$true] %s198_s23 }
  0x53   : > { %s1318_s4 = scalar_lea.sflag [#allocation6], %s187_s5  ;;  %s1003_s0 = scalar_lea.hbm %s1316_s30, 2048 }
  0x54   : > { %p1004_p7 = scmp.ne.s32.totalorder %s1316_s30, %s1003_s0  ;;  %s1008_s8 = scalar_lea.hbm %s1462_s1, 4096 }
  0x55   : > { %p1009_p8 = scmp.lt.u32.totalorder %s1316_s30, %s1462_s1  ;;  %p1010_p11 = scmp.lt.u32.totalorder %s1008_s8, %s1003_s0 }
  0x56   : > { %p1006_p4 = pnand %p1004_p7, %p975_p3  ;;  %p1012_p0 = scmp.lt.u32.totalorder %s1003_s0, %s1316_s30 }
  0x57   : > { %p1011_p12 = por %p1010_p11, %p1009_p8 }
  0x58   : > { %p1007_p6 = pneg %p1006_p4 }
  0x59   : > { %p1013_p5 = por %p1012_p0, %p1011_p12 }
  0x5b   : > { %p1014_p9 = pnand %p1013_p5, %p1007_p6 }
  0x5d   : > { %1017 = shalt.err (!%p1014_p9)
}
  0x5e   : > { %s1018_s11 = scalar_lea.vmem %s1309_s23, 2048  ;;  %s1129_s27 = smov [#allocation5]  }
  0x5f   : > { %p1019_p1 = scmp.ne.s32.totalorder %s1309_s23, %s1018_s11  ;;  %s1023_s5 = sshll.u32 %s1129_s27, 4  ;;  %s1024_s5 = int_to_ptr.vmem [resolvable:$false] %s1023_s5 }
  0x60   : > { %s1025_s7 = scalar_lea.vmem %s1024_s5, 4096  ;;  %p1026_p4 = scmp.lt.s32.totalorder %s1309_s23, %s1024_s5 }
  0x61   : > { %p1021_p2 = pnand %p1019_p1, %p975_p3  ;;  %p1027_p8 = scmp.lt.s32.totalorder %s1025_s7, %s1018_s11 }
  0x63   : > { %p1022_p7 = pneg %p1021_p2  ;;  %p1028_p11 = por %p1027_p8, %p1026_p4 }
  0x65   : > { %p1029_p12 = pnand %p1028_p11, %p1022_p7 }
  0x67   : > { %1032 = shalt.err (!%p1029_p12)
}
  0x68   : > { %s1130_s0 = smov 128   ;;  %s1131_s28 = smov 8  }
  0x69   : > { %878 = dma.hbm_to_vmem [thread:$0]  (!%p1274_p13), %s1316_s30, 2048, %s1309_s23, %s1318_s4, %s1130_s0, %s1130_s0, %s1131_s28  }
  0x6a   : > { %p1478_p3 = scmp.ne.s32.totalorder %s1471_s22, 0 }
  0x6b   : > { %s1347_s24 = sand.u32 (!%p1478_p3), 1, %s1107_s13   ;;  %p1479_p6 = scmp.ne.s32.totalorder (!%p1478_p3), %s1469_s20, 0 }
  0x6c   : > { %210 = sbr.rel (%p1478_p3) target bundleno = 597 (0x255), region = 32  ;;  %s662_s6 = sshll.u32 (!%p1478_p3), %s1347_s24, 3 }
  0x6d   : > { %s213_s8 = scalar_lea.sflag (!%p1478_p3), [#allocation3], %s1347_s24  ;;  %s1351_s10 = scalar_lea.vmem (!%p1478_p3), [#allocation2], %s662_s6 }
  0x73   : > { %1086 = dma.done.wait (%p1479_p6), %s213_s8, 128  }
  0x74   : > { %1088 = vsyncadd (%p1479_p6), %s213_s8, 4294967168  ;;  %s221_s22 = sand.u32 1, %s1189_s18   ;;  %s663_s9 = sshll.u32 %s1347_s24, 7 }
  0x75   : > { %s222_s23 = scalar_lea.sflag [#allocation6], %s221_s22  ;;  %s1359_s30 = scalar_lea.vmem [#allocation5], %s663_s9 }
  0x76   : > { %1090 = dma.done.wait (%p1479_p6), %s222_s23, 2048  }
  0x77   : > { %1092 = vsyncadd (%p1479_p6), %s222_s23, 4294965248  ;;  %p1480_p13 = scmp.eq.s32.totalorder %s1189_s18, 0 }
  0x79   : > { %1094 = dma.done.wait (%p1480_p13), [#allocation6], 4096   ;;  %p1481_p0 = pmov %p1480_p13 }
  0x7a   : > { %v1132_v0 = vmov 0.0   ;;  %v1133_v1 = vmov 0.0|0.0   ;;  %v275_v2 = vld [vmem:[#allocation7 + $0x8] sm:$0xff]  ;;  %v277_v3 = vld [vmem:[#allocation7 + $0x18] sm:$0xff]  ;;  %v274_v4 = vld [vmem:[#allocation7] sm:$0xff]  ;;  %vm1134_vm0 = vmmov 0  }
  0x7b   : > { %1096 = vsyncadd (%p1481_p0), [#allocation6], 4294963200  ;;  %370 = vmatprep.mubr.f32.mxu0 %v1132_v0  ;;  %810 = vmatprep.subr.bf16.mxu1 %v1133_v1  ;;  %v778_v5 = vpack.c.bf16 %v277_v3, %v275_v2  ;;  %v276_v6 = vld [vmem:[#allocation7 + $0x10] sm:$0xff]  ;;  %v279_v7 = vld [vmem:[#allocation7 + $0x28] sm:$0xff]  ;;  %s665_s18 = sshll.u32 %s1347_s24, 4  ;;  %s673_s19 = sshll.u32 %s1115_s15, 8 }
  0x7c   : > { %v281_v8 = vld [vmem:[#allocation7 + $0x38] sm:$0xff]  ;;  %v780_v9 = vpack.c.bf16 %v276_v6, %v274_v4  ;;  %v278_v11 = vld [vmem:[#allocation7 + $0x20] sm:$0xff]  ;;  %v280_v12 = vld [vmem:[#allocation7 + $0x30] sm:$0xff]  ;;  %740 = vmatprep.mubr.msk.f32.mxu1 %vm1134_vm0, %v1132_v0  ;;  %s256_s20 = scalar_lea.vmem [#allocation8], %s665_s18  ;;  %s1412_s5 = scalar_lea.hbm %s1464_s3, %s673_s19 }
  0x7d   : > { %v782_v10 = vpack.c.bf16 %v281_v8, %v279_v7  ;;  %v283_v13 = vld [vmem:[#allocation7 + $0x48] sm:$0xff]  ;;  %779 = vmatprep.subr.bf16.mxu0 %v778_v5  ;;  %v285_v14 = vld [vmem:[#allocation7 + $0x58] sm:$0xff]  ;;  %v784_v15 = vpack.c.bf16 %v280_v12, %v278_v11  ;;  %v282_v17 = vld [vmem:[#allocation7 + $0x40] sm:$0xff]  ;;  %s535_s4 = sshll.u32 %s256_s20, 4  ;;  %s521_s7 = scalar_lea.sflag [#allocation4], %s1347_s24  ;;  %s1407_s4 = int_to_ptr.vmem [resolvable:$true] %s535_s4 }
  0x7e   : > { %781 = vmatpush1.bf16.msra.mxu0 %v780_v9  ;;  %v786_v16 = vpack.c.bf16 %v285_v14, %v283_v13  ;;  %v284_v18 = vld [vmem:[#allocation7 + $0x50] sm:$0xff]  ;;  %v287_v19 = vld [vmem:[#allocation7 + $0x68] sm:$0xff]  ;;  %v289_v20 = vld [vmem:[#allocation7 + $0x78] sm:$0xff]  ;;  %s1033_s0 = scalar_lea.vmem %s1407_s4, 256  ;;  %s1135_s15 = smov [#allocation8]  }
  0x7f   : > { %783 = vmatprep.subr.bf16.mxu0 %v782_v10  ;;  %v788_v21 = vpack.c.bf16 %v284_v18, %v282_v17  ;;  %v790_v22 = vpack.c.bf16 %v289_v20, %v287_v19  ;;  %v286_v23 = vld [vmem:[#allocation7 + $0x60] sm:$0xff]  ;;  %v288_v24 = vld [vmem:[#allocation7 + $0x70] sm:$0xff]  ;;  %v291_v25 = vld [vmem:[#allocation7 + $0x88] sm:$0xff]  ;;  %p1034_p5 = scmp.ne.s32.totalorder %s1407_s4, %s1033_s0  ;;  %s1037_s28 = sshll.u32 %s1135_s15, 4  ;;  %s1038_s28 = int_to_ptr.vmem [resolvable:$false] %s1037_s28 }
  0x80   : > { %v293_v26 = vld [vmem:[#allocation7 + $0x98] sm:$0xff]  ;;  %v258_v27 = vld [vmem:[%s1359_s30] sm:$0xff]  ;;  %v259_v28 = vld [vmem:[%s1359_s30 + $0x8] sm:$0xff]  ;;  %v792_v29 = vpack.c.bf16 %v288_v24, %v286_v23  ;;  %s1039_s6 = scalar_lea.vmem %s1038_s28, 512  ;;  %p1040_p2 = scmp.lt.s32.totalorder %s1407_s4, %s1038_s28 }
  0x81   : > { %v811_v30 = vpack.c.bf16 %v259_v28, %v258_v27  ;;  %v794_v31 = vpack.c.bf16 %v293_v26, %v291_v25  ;;  %v290_v32 = vld [vmem:[#allocation7 + $0x80] sm:$0xff]  ;;  %v292_v33 = vld [vmem:[#allocation7 + $0x90] sm:$0xff]  ;;  %v295_v34 = vld [vmem:[#allocation7 + $0xa8] sm:$0xff]  ;;  %p1035_p9 = pnand %p1034_p5, %p1250_p10  ;;  %p1041_p7 = scmp.lt.s32.totalorder %s1039_s6, %s1033_s0 }
  0x82   : > { %785 = vmatpush1.bf16.msra.mxu0 %v784_v15  ;;  %v297_v35 = vld [vmem:[#allocation7 + $0xb8] sm:$0xff]  ;;  %v260_v36 = vld [vmem:[%s1359_s30 + $0x10] sm:$0xff]  ;;  %v796_v38 = vpack.c.bf16 %v292_v33, %v290_v32  ;;  %v294_v40 = vld [vmem:[#allocation7 + $0xa0] sm:$0xff] }
  0x83   : > { %787 = vmatprep.subr.bf16.mxu0 %v786_v16  ;;  %812 = vmatpush3.bf16.xpose.msra.mxu1 %v811_v30  ;;  %v261_v37 = vld [vmem:[%s1359_s30 + $0x18] sm:$0xff]  ;;  %v798_v39 = vpack.c.bf16 %v297_v35, %v295_v34  ;;  %v296_v41 = vld [vmem:[#allocation7 + $0xb0] sm:$0xff]  ;;  %v299_v42 = vld [vmem:[#allocation7 + $0xc8] sm:$0xff]  ;;  %p1036_p1 = pneg %p1035_p9  ;;  %p1042_p4 = por %p1041_p7, %p1040_p2 }
  0x84   : > { %813 = vmatprep.subr.bf16.mxu1 %v1133_v1  ;;  %v301_v43 = vld [vmem:[#allocation7 + $0xd8] sm:$0xff]  ;;  %v814_v44 = vpack.c.bf16 %v261_v37, %v260_v36  ;;  %v800_v45 = vpack.c.bf16 %v296_v41, %v294_v40  ;;  %v298_v47 = vld [vmem:[#allocation7 + $0xc0] sm:$0xff]  ;;  %v300_v48 = vld [vmem:[#allocation7 + $0xd0] sm:$0xff] }
  0x85   : > { %v802_v46 = vpack.c.bf16 %v301_v43, %v299_v42  ;;  %v303_v49 = vld [vmem:[#allocation7 + $0xe8] sm:$0xff]  ;;  %v305_v50 = vld [vmem:[#allocation7 + $0xf8] sm:$0xff]  ;;  %v262_v51 = vld [vmem:[%s1359_s30 + $0x20] sm:$0xff]  ;;  %v804_v53 = vpack.c.bf16 %v300_v48, %v298_v47  ;;  %p1043_p8 = pnand %p1042_p4, %p1036_p1 }
  0x86   : > { %789 = vmatpush1.bf16.msra.mxu0 %v788_v21  ;;  %v263_v52 = vld [vmem:[%s1359_s30 + $0x28] sm:$0xff]  ;;  %v806_v54 = vpack.c.bf16 %v305_v50, %v303_v49  ;;  %v302_v55 = vld [vmem:[#allocation7 + $0xe0] sm:$0xff]  ;;  %v304_v56 = vld [vmem:[#allocation7 + $0xf0] sm:$0xff] }
  0x87   : > { %791 = vmatprep.subr.bf16.mxu0 %v790_v22  ;;  %v817_v57 = vpack.c.bf16 %v263_v52, %v262_v51  ;;  %v808_v58 = vpack.c.bf16 %v304_v56, %v302_v55  ;;  %v264_v59 = vld [vmem:[%s1359_s30 + $0x30] sm:$0xff]  ;;  %v265_v60 = vld [vmem:[%s1359_s30 + $0x38] sm:$0xff]  ;;  %v266_v63 = vld [vmem:[%s1359_s30 + $0x40] sm:$0xff] }
  0x88   : > { %v257_v61 = vld [vmem:[%s1351_s10] sm:$0xff]  ;;  %v820_v62 = vpack.c.bf16 %v265_v60, %v264_v59  ;;  %v267_v2 = vld [vmem:[%s1359_s30 + $0x48] sm:$0xff]  ;;  %v270_v7 = vld [vmem:[%s1359_s30 + $0x60] sm:$0xff] }
  0x89   : > { %v823_v3 = vpack.c.bf16 %v267_v2, %v266_v63  ;;  %v268_v4 = vld [vmem:[%s1359_s30 + $0x50] sm:$0xff]  ;;  %v269_v5 = vld [vmem:[%s1359_s30 + $0x58] sm:$0xff]  ;;  %v271_v8 = vld [vmem:[%s1359_s30 + $0x68] sm:$0xff] }
  0x8a   : > { %793 = vmatpush1.bf16.msra.mxu0 %v792_v29  ;;  %v826_v6 = vpack.c.bf16 %v269_v5, %v268_v4  ;;  %v829_v9 = vpack.c.bf16 %v271_v8, %v270_v7  ;;  %v272_v10 = vld [vmem:[%s1359_s30 + $0x70] sm:$0xff]  ;;  %v273_v11 = vld [vmem:[%s1359_s30 + $0x78] sm:$0xff] }
  0x8b   : > { %795 = vmatprep.subr.bf16.mxu0 %v794_v31  ;;  %815 = vmatpush3.bf16.xpose.msra.mxu1 %v814_v44  ;;  %v832_v12 = vpack.c.bf16 %v273_v11, %v272_v10 }
  0x8c   : > { %816 = vmatprep.subr.bf16.mxu1 %v1133_v1 }
  0x8e   : > { %797 = vmatpush1.bf16.msra.mxu0 %v796_v38 }
  0x8f   : > { %799 = vmatprep.subr.bf16.mxu0 %v798_v39 }
  0x92   : > { %801 = vmatpush1.bf16.msra.mxu0 %v800_v45 }
  0x93   : > { %803 = vmatprep.subr.bf16.mxu0 %v802_v46  ;;  %818 = vmatpush3.bf16.xpose.msra.mxu1 %v817_v57 }
  0x94   : > { %819 = vmatprep.subr.bf16.mxu1 %v1133_v1 }
  0x96   : > { %805 = vmatpush1.bf16.msra.mxu0 %v804_v53 }
  0x97   : > { %807 = vmatprep.subr.bf16.mxu0 %v806_v54 }
  0x9a   : > { %809 = vmatpush1.bf16.msra.mxu0 %v808_v58 }
  0x9b   : > { %834 = vmatprep.subr.bf16.mxu0 %v1133_v1  ;;  %821 = vmatpush3.bf16.xpose.msra.mxu1 %v820_v62 }
  0x9c   : > { %822 = vmatprep.subr.bf16.mxu1 %v1133_v1 }
  0x9d   : > { %371 = vmatmul.mubr.f32.vlgmr.msra.gmra.mrb[0].mxu0 %v257_v61 }
  0x9e   : > { %775 = vmatprep.mubr.msk.f32.mxu0 %vm1134_vm0, %v1132_v0 }
  0xa3   : > { %836 = vmatpush3.bf16.xpose.msra.mxu0 %v811_v30  ;;  %824 = vmatpush3.bf16.xpose.msra.mxu1 %v823_v3 }
  0xa4   : > { %837 = vmatprep.subr.bf16.mxu0 %v1133_v1  ;;  %825 = vmatprep.subr.bf16.mxu1 %v1133_v1 }
  0xab   : > { %839 = vmatpush3.bf16.xpose.msra.mxu0 %v814_v44  ;;  %827 = vmatpush3.bf16.xpose.msra.mxu1 %v826_v6 }
  0xac   : > { %840 = vmatprep.subr.bf16.mxu0 %v1133_v1  ;;  %828 = vmatprep.subr.bf16.mxu1 %v1133_v1 }
  0xb3   : > { %842 = vmatpush3.bf16.xpose.msra.mxu0 %v817_v57  ;;  %830 = vmatpush3.bf16.xpose.msra.mxu1 %v829_v9 }
  0xb4   : > { %843 = vmatprep.subr.bf16.mxu0 %v1133_v1  ;;  %831 = vmatprep.subr.bf16.mxu1 %v1133_v1 }
  0xbb   : > { %845 = vmatpush3.bf16.xpose.msra.mxu0 %v820_v62  ;;  %833 = vmatpush3.bf16.xpose.msra.mxu1 %v832_v12 }
  0xbc   : > { %846 = vmatprep.subr.bf16.mxu0 %v1133_v1 }
  0xc3   : > { %848 = vmatpush3.bf16.xpose.msra.mxu0 %v823_v3 }
  0xc4   : > { %849 = vmatprep.subr.bf16.mxu0 %v1133_v1 }
  0xcb   : > { %851 = vmatpush3.bf16.xpose.msra.mxu0 %v826_v6 }
  0xcc   : > { %852 = vmatprep.subr.bf16.mxu0 %v1133_v1 }
  0xd3   : > { %854 = vmatpush3.bf16.xpose.msra.mxu0 %v829_v9 }
  0xd4   : > { %855 = vmatprep.subr.bf16.mxu0 %v1133_v1 }
  0xdb   : > { %857 = vmatpush3.bf16.xpose.msra.mxu0 %v832_v12 }
 0x170   : > { %v372_v13 = vpop.f32.mrb[0].mxu0 }
 0x171   : > { %v374_v14 = vpop.f32.mrb[1].mxu0  ;;  %741 = vmatmul.mubr.f32.vlgmr.msra.gmra.mrb[0].mxu1 %v372_v13 }
 0x172   : > { %776 = vmatmul.mubr.f32.vlgmr.msra.gmra.mrb[2].mxu0 %v374_v14 }
 0x244   : > { %v443_v0 = vpop.f32.mrb[0].mxu1 }
 0x245   : > { %447 = vst [vmem:[%s256_s20] sm:$0xff] %v443_v0  ;;  %v742_v1 = vpop.f32.mrb[1].mxu1  ;;  %v514_v15 = vpop.f32.mrb[2].mxu0 }
 0x246   : > { %666 = vst [vmem:[%s256_s20 + $0x8] sm:$0xff] %v514_v15  ;;  %v777_v16 = vpop.f32.mrb[3].mxu0 }
 0x247   : > { %1046 = shalt.err (!%p1043_p8)
}
 0x248   : > { %s1047_s8 = scalar_lea.hbm %s1412_s5, 256  ;;  %s1051_s9 = scalar_lea.hbm %s1464_s3, 512 }
 0x249   : > { %p1048_p11 = scmp.ne.s32.totalorder %s1412_s5, %s1047_s8  ;;  %p1052_p6 = scmp.lt.u32.totalorder %s1412_s5, %s1464_s3 }
 0x24a   : > { %p1053_p13 = scmp.lt.u32.totalorder %s1051_s9, %s1047_s8  ;;  %p1055_p5 = scmp.lt.u32.totalorder %s1047_s8, %s1412_s5 }
 0x24b   : > { %p1049_p12 = pnand %p1048_p11, %p1250_p10 }
 0x24c   : > { %p1054_p0 = por %p1053_p13, %p1052_p6 }
 0x24d   : > { %p1050_p3 = pneg %p1049_p12 }
 0x24e   : > { %p1056_p9 = por %p1055_p5, %p1054_p0 }
 0x250   : > { %p1057_p1 = pnand %p1056_p9, %p1050_p3 }
 0x252   : > { %1060 = shalt.err (!%p1057_p1)
}
 0x253   : > { %s1136_s18 = smov 128   ;;  %s1137_s20 = smov 8  }
 0x254   : > { %866 = dma.vmem_to_hbm [thread:$0]  (%p1250_p10), %s1407_s4, 256, %s1412_s5, %s521_s7, %s1136_s18, %s1136_s18, %s1137_s20  }
 0x255 PF: > { %s550_s19 = sand.u32 1, %s1103_s12   ;;  %p1482_p2 = scmp.ne.s32.totalorder %s1470_s21, 0 }
 0x256   : > { %p1483_p7 = scmp.ge.s32.totalorder %s1123_s17, 2  ;;  %s551_s11 = scalar_lea.sflag [#allocation4], %s550_s19 }
 0x258   : > { %p880_p4 = pnand %p1483_p7, %p1482_p2 }
 0x25a   : > { %1098 = dma.done.wait (!%p880_p4), %s551_s11, 256  }
 0x25b   : > { %1100 = vsyncadd (!%p880_p4), %s551_s11, 4294967040  ;;  %s22_s17 = sadd.s32 1, %s1123_s17   ;;  %s1484_s12 = smov %s1107_s13 }
 0x25c   : > { %p19_p8 = scmp.ge.s32.totalorder %s22_s17, 4   ;;  %s1485_s13 = smov %s1111_s14 }
 0x25d   : > { %s1486_s14 = smov %s1262_s29  ;;  %s1487_s15 = smov %s1119_s16 }
 0x25e   : > { %s1488_s16 = smov %s1490_s26  ;;  %21 = sbr.rel (!%p19_p8) target bundleno = 10 (0xa), region = 95 }
 0x265   :  { %556 = vsyncpa [#allocation3], 1 }
 0x266   :  { %558 = vsyncpa [#allocation3 + $0x1], 1 }
 0x267   :  { %559 = vsyncpa [#allocation6], 1 }
 0x268   :  { %561 = vsyncpa [#allocation6 + $0x1], 1 }
 0x269   :  { %562 = vsyncpa [#allocation4], 1 }
 0x26a   :  { %564 = vsyncpa [#allocation4 + $0x1], 1 }

</bundles_post_ra>
